<compile_context>
chip_gen: v5e
topology: v5e:2x2
jax: 0.10.0
libtpu: 0.0.40
codegen_flags: <defaults>
</compile_context>

<pallas_src>
import jax
import jax.numpy as jnp
from jax.experimental import pallas as pl
from jax.experimental.pallas import tpu as pltpu


def _round_up(x, m):
    return ((x + m - 1) // m) * m


def lora_kernel(alpha_ref, x_ref, a_ref, b_ref, o_ref):
    # alpha_ref: (1,) f32 SMEM scalar
    # x_ref: (tb, in_dim) bf16   a_ref: (in_dim, rank) bf16
    # b_ref: (rank, out_p) bf16  o_ref: (tb, out_p) bf16
    xa = jnp.dot(x_ref[...], a_ref[...], preferred_element_type=jnp.float32)
    # bf16 intermediate mirrors the PyTorch bf16 result of (x @ A).
    xa = xa.astype(jnp.bfloat16)
    xab = jnp.dot(xa, b_ref[...], preferred_element_type=jnp.float32)
    # alpha applied to the final product (reference ordering), folded into the
    # f32 slab before the single bf16 cast.
    o_ref[...] = (alpha_ref[0] * xab).astype(o_ref.dtype)


def lora_forward(x, A, B, alpha, *, tb=512, vmem_limit_bytes=48 * 1024 * 1024):
    batch, in_dim = x.shape
    rank, out_dim = B.shape
    assert A.shape == (in_dim, rank)

    x = x.astype(jnp.bfloat16)
    A = A.astype(jnp.bfloat16)
    B = B.astype(jnp.bfloat16)

    # Lane-dense output: pad out_dim up to a multiple of 128 (tiny pad on B).
    out_p = _round_up(out_dim, 128)
    if out_p != out_dim:
        B = jnp.pad(B, ((0, 0), (0, out_p - out_dim)))

    # Batch tile: multiple of 16 (bf16 packs 16 sublanes per vreg), capped so
    # double-buffered bf16 x/out tiles + resident weights + f32 intermediates
    # of both matmuls stay within ~half the VMEM limit.
    weight_bytes = 2 * 2 * (in_dim * rank + rank * out_p)      # double-buffered bf16
    per_row_bytes = 4 * (in_dim + out_p) + 4 * out_p + 6 * rank
    budget = max(vmem_limit_bytes // 2 - weight_bytes, 16 * per_row_bytes)
    tb_cap = max(16, (budget // per_row_bytes) // 16 * 16)
    tb = min(tb, tb_cap, _round_up(batch, 16))
    tb = max(16, (tb // 16) * 16)

    alpha_arr = jnp.asarray([alpha], dtype=jnp.float32)

    grid = (pl.cdiv(batch, tb),)  # ragged last tile handled by masked stores
    flops = 2 * batch * rank * (in_dim + out_p)
    bytes_accessed = 2 * (batch * in_dim + in_dim * rank
                          + rank * out_p + batch * out_p)

    out = pl.pallas_call(
        lora_kernel,
        out_shape=jax.ShapeDtypeStruct((batch, out_p), jnp.bfloat16),
        grid_spec=pltpu.PrefetchScalarGridSpec(
            num_scalar_prefetch=0,
            grid=grid,
            in_specs=[
                # runtime alpha scalar lives in SMEM (swap alpha w/o recompile)
                pl.BlockSpec(memory_space=pltpu.MemorySpace.SMEM),
                # x tiled over batch rows
                pl.BlockSpec((tb, in_dim), lambda i: (i, 0)),
                # A and B fully resident; constant block index => re-copies
                # are elided after the first grid step.
                pl.BlockSpec((in_dim, rank), lambda i: (0, 0)),
                pl.BlockSpec((rank, out_p), lambda i: (0, 0)),
            ],
            out_specs=pl.BlockSpec((tb, out_p), lambda i: (i, 0)),
        ),
        compiler_params=pltpu.CompilerParams(
            dimension_semantics=("parallel",),
            vmem_limit_bytes=vmem_limit_bytes,
        ),
        cost_estimate=pl.CostEstimate(
            flops=flops, transcendentals=0, bytes_accessed=bytes_accessed),
    )(alpha_arr, x, A, B)

    if out_p != out_dim:
        out = out[:, :out_dim]
    return out


if __name__ == "__main__":
    # Deterministic parameter / input construction (no checkpoint loading).
    key = jax.random.PRNGKey(0)
    k_x, k_a, k_b = jax.random.split(key, 3)

    # Small shapes; batch=40 deliberately not a multiple of 16 to exercise the
    # ragged-tile path, out_dim=64 exercises the lane-dense (pad-to-128) path.
    batch, in_dim, out_dim, rank = 40, 32, 64, 8
    alpha = 2.0

    std_dev = 1.0 / jnp.sqrt(jnp.float32(rank))
    A = (jax.random.normal(k_a, (in_dim, rank), dtype=jnp.float32) * std_dev
         ).astype(jnp.bfloat16)
    # The module initializes B to zeros; use nonzero values here so the kernel
    # output is actually exercised (an all-zero output would hide bugs).
    B = (jax.random.normal(k_b, (rank, out_dim), dtype=jnp.float32) * 0.5
         ).astype(jnp.bfloat16)
    x = jax.random.normal(k_x, (batch, in_dim), dtype=jnp.float32
                          ).astype(jnp.bfloat16)

    # Reference with PyTorch bf16 semantics: bf16 intermediate, alpha applied
    # to the final product.
    ref = (alpha * (
        (x.astype(jnp.float32) @ A.astype(jnp.float32)).astype(jnp.bfloat16)
        .astype(jnp.float32) @ B.astype(jnp.float32))).astype(jnp.bfloat16)

    # Default (large-tile) config: single grid step at this tiny batch.
    out = lora_forward(x, A, B, alpha)
    jax.block_until_ready(out)
    assert out.shape == (batch, out_dim)
    assert out.dtype == jnp.bfloat16
    assert jnp.allclose(out.astype(jnp.float32), ref.astype(jnp.float32),
                        atol=1e-1, rtol=1e-1)

    # Small tile to exercise the multi-step grid + ragged last-tile path.
    out2 = lora_forward(x, A, B, alpha, tb=16)
    jax.block_until_ready(out2)
    assert jnp.allclose(out2.astype(jnp.float32), ref.astype(jnp.float32),
                        atol=1e-1, rtol=1e-1)

    print("KERNEL_OK")
</pallas_src>

<mosaic_0001>
module attributes {stable_mosaic.version = 11 : i64} {
  func.func @lora_kernel(%arg0: i32, %arg1: memref<1xf32, #tpu.memory_space<smem>>, %arg2: memref<48x32xbf16, #tpu.memory_space<vmem>>, %arg3: memref<32x8xbf16, #tpu.memory_space<vmem>>, %arg4: memref<8x128xbf16, #tpu.memory_space<vmem>>, %arg5: memref<48x128xbf16, #tpu.memory_space<vmem>>) attributes {dimension_semantics = [#tpu.dimension_semantics<parallel>], iteration_bounds = array<i64: 1>, scalar_prefetch = 0 : i64, scratch_operands = 0 : i64, tpu.core_type = #tpu.core_type<tc>, window_params = [{transform_indices = @transform_0, window_bounds = array<i64: 1>}, {transform_indices = @transform_1, window_bounds = array<i64: 48, 32>}, {pipeline_mode = #tpu.pipeline_mode<synchronous>, transform_indices = @transform_2, window_bounds = array<i64: 32, 8>}, {pipeline_mode = #tpu.pipeline_mode<synchronous>, transform_indices = @transform_3, window_bounds = array<i64: 8, 128>}, {transform_indices = @transform_4, window_bounds = array<i64: 48, 128>}]} {
    %c0 = arith.constant 0 : index
    %c0_0 = arith.constant 0 : index
    %0 = vector.load %arg2[%c0, %c0_0] : memref<48x32xbf16, #tpu.memory_space<vmem>>, vector<48x32xbf16>
    %c0_1 = arith.constant 0 : index
    %c0_2 = arith.constant 0 : index
    %1 = vector.load %arg3[%c0_1, %c0_2] : memref<32x8xbf16, #tpu.memory_space<vmem>>, vector<32x8xbf16>
    %cst = arith.constant dense<0.000000e+00> : vector<48x8xf32>
    %2 = tpu.matmul %0, %1, %cst {dimension_numbers = #tpu.dot_dimension_numbers<[1], [0], [0], [1], [0, 0, 1, 1], [], []>} : vector<48x32xbf16>, vector<32x8xbf16>, vector<48x8xf32> -> vector<48x8xf32>
    %3 = arith.truncf %2 : vector<48x8xf32> to vector<48x8xbf16>
    %c0_3 = arith.constant 0 : index
    %c0_4 = arith.constant 0 : index
    %4 = vector.load %arg4[%c0_3, %c0_4] : memref<8x128xbf16, #tpu.memory_space<vmem>>, vector<8x128xbf16>
    %cst_5 = arith.constant dense<0.000000e+00> : vector<48x128xf32>
    %5 = tpu.matmul %3, %4, %cst_5 {dimension_numbers = #tpu.dot_dimension_numbers<[1], [0], [0], [1], [0, 0, 1, 1], [], []>} : vector<48x8xbf16>, vector<8x128xbf16>, vector<48x128xf32> -> vector<48x128xf32>
    %c0_6 = arith.constant 0 : index
    %6 = memref.load %arg1[%c0_6] : memref<1xf32, #tpu.memory_space<smem>>
    %7 = vector.broadcast %6 : f32 to vector<48x128xf32>
    %8 = arith.mulf %7, %5 : vector<48x128xf32>
    %9 = arith.truncf %8 : vector<48x128xf32> to vector<48x128xbf16>
    %c0_7 = arith.constant 0 : index
    %c0_8 = arith.constant 0 : index
    %10 = vector.load %arg5[%c0_7, %c0_8] : memref<48x128xbf16, #tpu.memory_space<vmem>>, vector<48x128xbf16>
    tpu.vector_store %arg5[%c0_7, %c0_8], %9 {strides = array<i32>} : memref<48x128xbf16, #tpu.memory_space<vmem>>, vector<48x128xbf16>,
    return
  }
  func.func @transform_0(%arg0: i32) -> i32 {
    %c0_i32 = arith.constant 0 : i32
    %c0_i32_0 = arith.constant 0 : i32
    return %c0_i32 : i32
  }
  func.func @transform_1(%arg0: i32) -> (i32, i32) {
    %c0_i32 = arith.constant 0 : i32
    %c0_i32_0 = arith.constant 0 : i32
    return %arg0, %c0_i32 : i32, i32
  }
  func.func @transform_2(%arg0: i32) -> (i32, i32) {
    %c0_i32 = arith.constant 0 : i32
    %c0_i32_0 = arith.constant 0 : i32
    %c0_i32_1 = arith.constant 0 : i32
    return %c0_i32, %c0_i32_0 : i32, i32
  }
  func.func @transform_3(%arg0: i32) -> (i32, i32) {
    %c0_i32 = arith.constant 0 : i32
    %c0_i32_0 = arith.constant 0 : i32
    %c0_i32_1 = arith.constant 0 : i32
    return %c0_i32, %c0_i32_0 : i32, i32
  }
  func.func @transform_4(%arg0: i32) -> (i32, i32) {
    %c0_i32 = arith.constant 0 : i32
    %c0_i32_0 = arith.constant 0 : i32
    return %arg0, %c0_i32 : i32, i32
  }
}

</mosaic_0001>

<bundles_post_ra>
// kernel: tpu_custom_call.1
= control target key start
LH: loop header
LB: loop body
LE: loop exit
PB: predicated region body
PF: predicated region fallthrough
CT: control target
= control target key end

     0   :  { %s303_s0 = inlined_call_operand.<no memory space> [shape: f32[1], index: 0, kind: input, shape index: {}]   ;;  %s304_s1 = inlined_call_operand.vmem [shape: bf16[40,32], index: 1, kind: input, shape index: {}]   ;;  %s305_s2 = inlined_call_operand.vmem [shape: bf16[32,8], index: 2, kind: input, shape index: {}]   ;;  %s306_s3 = inlined_call_operand.vmem [shape: bf16[8,128], index: 3, kind: input, shape index: {}]   ;;  %s307_s4 = inlined_call_operand.hbm [shape: bf16[40,128], index: 4, kind: output, shape index: {}]  }
   0x1   :  { %v201_v0 = vld [vmem:[%s305_s2 + $0x8] sm:$0xff] }
   0x2   :  { %10 = vsyncpa [#allocation4], 0  ;;  %219 = vmatpush.bf16.msra.mxu2 %v201_v0  ;;  %v200_v1 = vld [vmem:[%s305_s2] sm:$0xff]  ;;  %73 = vmatpush.bf16.msra.mxu0 %v201_v0  ;;  %v198_v2 = vld [vmem:[%s304_s1 + $0x8] sm:$0xff]  ;;  %vm57_vm0 = vcmask 261120   ;;  %vm105_vm1 = vcmask 1043456   ;;  %v134_v17 = vstv %s303_s0 }
   0x3   :  { %v197_v3 = vld [vmem:[%s304_s1] sm:$0xff]  ;;  %v199_v4 = vld [vmem:[%s304_s1 + $0x10] sm:$0xff]  ;;  %vm95_vm2 = vcmask 64512  }
   0x4   :  { %v94_v5 = vld [vmem:[%s306_s3] sm:$0xf] }
   0x5   :  { %v107_v6 = vsel %vm105_vm1, %v94_v5, 0 }
   0x6   :  { %220 = vmatpush.bf16.msra.mxu2 %v200_v1  ;;  %74 = vmatpush.bf16.msra.mxu0 %v200_v1 }
   0x7   :  { %221 = vmatpush.bf16.msra.mxu3 %v107_v6  ;;  %116 = vmatpush.bf16.msra.mxu1 %v107_v6 }
   0x9   :  { %192 = vmatmul.msk.bf16.vlgmr.msra.gmra.mxu2 %vm57_vm0, %v198_v2  ;;  %191 = vmatmul.msk.bf16.vlgmr.msra.gmra.mxu0 %vm57_vm0, %v197_v3 }
  0x19   :  { %193 = vmatmul.msk.bf16.gmra.mxu2 %vm57_vm0, %v199_v4 }
  0x86   :  { %v76_v7 = vpop.f32.mrf.mxu0 }
  0x8c   :  { %v81_v8 = vpop.f32.mrf.mxu2 }
  0x8e   :  { %v78_v9 = vpop.f32.mrf.mxu0 }
  0x8f   :  { %v91_v10 = vpack.c.bf16 %v78_v9, %v76_v7 }
  0x91   :  { %194 = vmatmul.msk.bf16.vlgmr.msra.gmra.mxu1 %vm95_vm2, %v91_v10 }
  0x94   :  { %v83_v11 = vpop.f32.mrf.mxu2 }
  0x95   :  { %v92_v12 = vpack.c.bf16 %v83_v11, %v81_v8 }
  0x97   :  { %195 = vmatmul.msk.bf16.vlgmr.msra.gmra.mxu3 %vm95_vm2, %v92_v12 }
  0x9c   :  { %v86_v13 = vpop.f32.mrf.mxu2 }
  0xa4   :  { %v88_v14 = vpop.f32.mrf.mxu2 }
  0xa5   :  { %v93_v15 = vpack.c.bf16 %v88_v14, %v86_v13 }
  0xa7   :  { %196 = vmatmul.msk.bf16.gmra.mxu3 %vm95_vm2, %v93_v15 }
 0x10e   :  { %v118_v16 = vpop.f32.mrf.mxu1 }
 0x10f   :  { %v135_v18 = vmul.f32 %v134_v17, %v118_v16 }
 0x116   :  { %v120_v19 = vpop.f32.mrf.mxu1 }
 0x117   :  { %v136_v20 = vmul.f32 %v134_v17, %v120_v19 }
 0x119   :  { %v205_v21 = vpack.c.bf16 %v136_v20, %v135_v18 }
 0x11a   :  { %v123_v22 = vpop.f32.mrf.mxu3 }
 0x11b   :  { %206 = vst [vmem:[#allocation3] sm:$0xff] %v205_v21   ;;  %v137_v24 = vmul.f32 %v134_v17, %v123_v22 }
 0x122   :  { %v125_v23 = vpop.f32.mrf.mxu3 }
 0x123   :  { %v138_v25 = vmul.f32 %v134_v17, %v125_v23 }
 0x125   :  { %v210_v26 = vpack.c.bf16 %v138_v25, %v137_v24 }
 0x127   :  { %217 = vst [vmem:[#allocation3 + $0x8] sm:$0xff] %v210_v26  }
 0x12a   :  { %v128_v27 = vpop.f32.mrf.mxu3 }
 0x12b   :  { %v139_v29 = vmul.f32 %v134_v17, %v128_v27 }
 0x132   :  { %v130_v28 = vpop.f32.mrf.mxu3 }
 0x133   :  { %v140_v30 = vmul.f32 %v134_v17, %v130_v28 }
 0x135   :  { %v215_v31 = vpack.c.bf16 %v140_v30, %v139_v29 }
 0x137   :  { %218 = vst [vmem:[#allocation3 + $0x10] sm:$0xff] %v215_v31  }
 0x138   :  { %156 = vsyncadd [#allocation4], 64  ;;  %s159_s27 = sshll.u32 %s307_s4, 4  ;;  %s251_s28 = smov [#allocation3]   ;;  %s160_s27 = int_to_ptr.hbm [resolvable:$true] %s159_s27 }
 0x139   :  { %s157_s29 = sshll.u32 %s251_s28, 4  ;;  %s252_s30 = smov 64   ;;  %s158_s29 = int_to_ptr.vmem [resolvable:$true] %s157_s29 }
 0x13a   :  { %s253_s5 = smov 4  }
 0x13b   :  { %165 = dma.vmem_to_hbm [thread:$0]  %s158_s29, 320, %s160_s27, [#allocation4], %s252_s30, %s252_s30, %s253_s5  }
 0x13c   :  { %249 = dma.done.wait [#allocation4], 384  }
 0x13d   :  { %250 = vsyncadd [#allocation4], 4294966912 }
 0x13e   :  { %170 = vsyncpa [#allocation4], 1 }

</bundles_post_ra>
